<compile_context>
chip_gen: v5e
topology: v5e:2x2
jax: 0.10.0
libtpu: 0.0.40
codegen_flags: <defaults>
</compile_context>

<pallas_src>
import functools

import numpy as np
import jax
import jax.numpy as jnp
from jax.experimental import pallas as pl
from jax.experimental.pallas import tpu as pltpu


# ----------------------------------------------------------------------------
# Order computation (faithful port of the PyTorch helpers)
# ----------------------------------------------------------------------------
def multi_order(s_out, order_0, n):
    solves, stats = [], []
    for i in range(1, int(n)):
        c = 6 * order_0 ** i
        m = n - i
        order_low = (s_out / c) ** (1 / (m + 1))
        order_up = (s_out / c) ** (1 / m)
        order_1 = order_up // 1
        if not (order_1 <= order_up and order_1 > order_low) or order_1 == 1:
            continue
        solves.append([order_0, order_1, i, m])
        stats.append(order_0 * i + order_1 * m)
    idx = int(np.argmin(stats))
    solves = solves[idx]
    order_list = []
    for _ in range(int(n)):
        idx = int(np.argmax(solves[2:4]))
        order_list.append(int(solves[idx]))
        solves[2 + idx] -= 1
    return order_list


def calculate_order(c_in, s_in, s_out, order_in, order_out):
    n_in = np.log(s_in) / np.log(order_in) // 1
    order_out_low = (s_out / c_in) ** (1 / (1 + n_in))
    order_out_up = (s_out / c_in) ** (1 / n_in)
    order_out = order_out_up // 1
    with np.errstate(divide="ignore"):
        n_out = np.log(s_out / 2) / np.log(order_out) // 1
    if not (order_out <= order_out_up and order_out > order_out_low) or order_out == 1:
        order_out_list = multi_order(s_out, order_out, n_in)
    else:
        order_out_list = [int(order_out)] * int(n_out)
    order_in_list = [int(order_in)] * int(n_in)
    return int(n_in), order_in_list, order_out_list


# ----------------------------------------------------------------------------
# Module configuration (mirrors FreqConv.projection_init)
# ----------------------------------------------------------------------------
def build_config(c_in, inp_len, pred_len, kernel_size, order=2):
    s_in = (inp_len + 1) // 2
    n, order_in, order_out = calculate_order(c_in, s_in, pred_len, order, None)
    dilation = [2 ** i for i in range(n)]
    padding = [(kernel_size - 1) * (dilation[i] - 1) + kernel_size - 1 for i in range(n)]
    pad_front = [padding[i] // 2 for i in range(n)]
    pad_behind = [padding[i] - pad_front[i] for i in range(n)]
    layers = []
    s_out = c_in
    w = s_in
    for i in range(n):
        layers.append(dict(c_in=s_out, oo=order_out[i], c_out=s_out * order_out[i],
                           w_in=w, d=dilation[i], pf=pad_front[i], pb=pad_behind[i],
                           pool=order_in[i], w_out=w // order_in[i]))
        w = w // order_in[i]
        s_out = s_out * order_out[i]
    return dict(n=n, layers=layers, final_c=s_out, final_w=w,
                kernel_size=kernel_size, pred_len=pred_len)


# ----------------------------------------------------------------------------
# Deterministic parameter init (Conv2d weight/bias shapes from __init__)
# ----------------------------------------------------------------------------
def init_params(key, cfg):
    params = dict(conv_w=[], conv_b=[])
    k = cfg["kernel_size"]
    for layer in cfg["layers"]:
        key, k1, k2 = jax.random.split(key, 3)
        c_out = layer["c_out"]
        bound = 1.0 / np.sqrt(k)  # grouped conv: in_ch/groups * 1 * k = k
        params["conv_w"].append(jax.random.uniform(k1, (c_out, k), jnp.float32, -bound, bound))
        params["conv_b"].append(jax.random.uniform(k2, (c_out,), jnp.float32, -bound, bound))
    key, k1, k2 = jax.random.split(key, 3)
    fc, fwid = cfg["final_c"], cfg["final_w"]
    bound = 1.0 / np.sqrt(fc * fwid)
    params["final_w"] = jax.random.uniform(k1, (cfg["pred_len"], fc, fwid), jnp.float32, -bound, bound)
    params["final_b"] = jax.random.uniform(k2, (cfg["pred_len"],), jnp.float32, -bound, bound)
    return params


# ----------------------------------------------------------------------------
# Host-side affine fold: the whole stack is  h_final = h0 @ prod_i(A_i P_i) + b
# and y_conv = h_final @ fwT + fb  ->  precompute  M = prod(A_i P_i) @ fwT  and
# the bias row c.  Done in float64 numpy (exact structural 0/1 and 1/p factors;
# learned weights folded losslessly).
# ----------------------------------------------------------------------------
def build_affine(cfg, params):
    k = cfg["kernel_size"]
    M_lin, bias = None, None
    for idx, L in enumerate(cfg["layers"]):
        c_in, oo, c_out = L["c_in"], L["oo"], L["c_out"]
        W, d, pf, p, Wo = L["w_in"], L["d"], L["pf"], L["pool"], L["w_out"]
        wk = np.asarray(params["conv_w"][idx], dtype=np.float64)   # (c_out, k)
        bk = np.asarray(params["conv_b"][idx], dtype=np.float64)   # (c_out,)
        # dilated grouped conv along W as a matrix on the (c, w) flattened lanes
        A = np.zeros((c_in * W, c_out * W), np.float64)
        for co in range(c_out):
            ci = co // oo
            for t in range(k):
                s = t * d - pf
                for w in range(W):
                    a = w + s
                    if 0 <= a < W:
                        A[ci * W + a, co * W + w] += wk[co, t]
        b_row = np.repeat(bk, W)[None, :]                          # (1, c_out*W)
        # avg-pool along W as a matrix
        P = np.zeros((c_out * W, c_out * Wo), np.float64)
        for c in range(c_out):
            for wo in range(Wo):
                for j in range(p):
                    P[c * W + p * wo + j, c * Wo + wo] = 1.0 / p
        Li = A @ P
        ci_row = b_row @ P
        if M_lin is None:
            M_lin, bias = Li, ci_row
        else:
            bias = bias @ Li + ci_row
            M_lin = M_lin @ Li
    fwT = np.asarray(params["final_w"], dtype=np.float64).reshape(cfg["pred_len"], -1).T
    fb = np.asarray(params["final_b"], dtype=np.float64)
    M = (M_lin @ fwT).astype(np.float32)                           # (C0*W0, pred_len)
    c = (bias @ fwT + fb[None, :]).astype(np.float32)              # (1, pred_len)
    return M, c


def _round_up(x, m):
    return (x + m - 1) // m * m


# ----------------------------------------------------------------------------
# One-time constant preparation (hoisted out of the per-call forward path):
# pad the folded matrix to lane-dense (Kp, 128*ceil(pred_len/128)) bf16 and
# write the bias row at row index K so the kernel's 1.0 bias column of the
# activations realizes "+ c" inside the same matmul.
# ----------------------------------------------------------------------------
def prepare_folded(M, c_row):
    K, pred_len = M.shape
    Kp = _round_up(K + 1, 128)          # +1 column reserved for the bias term
    Np = _round_up(pred_len, 128)       # lane-dense MXU contraction output
    Mp = np.zeros((Kp, Np), np.float32)
    Mp[:K, :pred_len] = M
    Mp[K, :pred_len] = c_row[0]
    return jnp.asarray(Mp, dtype=jnp.bfloat16), K


# ----------------------------------------------------------------------------
# Pallas kernel: one bf16 matmul (f32 accumulation) + f32 residual epilogue.
# ----------------------------------------------------------------------------
def _affine_residual_kernel(h_ref, res_ref, m_ref, out_ref):
    # bias is folded into m (row K, activated by the 1.0 column of h), so the
    # epilogue is just the f32 residual add; the (TM, Np) result is sliced to
    # pred_len lanes in-register before the narrow full-extent store.
    y = jnp.dot(h_ref[...], m_ref[...], preferred_element_type=jnp.float32)
    out_ref[...] = y[:, : out_ref.shape[-1]] + res_ref[...]


def _row_tile(rows):
    # 16-aligned rows (bf16 sublane packing).  Guarantee >= 2 grid steps when
    # rows allow, so dimension_semantics=("parallel",) can shard the grid over
    # the two TensorCores on v7x; cap the tile at 512 rows (HBM-roofline sweet
    # spot per measured tiled mem-bound data).
    if rows < 32:
        return _round_up(rows, 16)
    if rows <= 1024:
        return _round_up(-(-rows // 2), 16)
    return 512


def freqconv_affine_pallas(h_pad, res_pad, Mp, pred_len, rows_pad, TM):
    Kp, Np = Mp.shape
    grid = rows_pad // TM
    flops = 2 * rows_pad * Kp * Np
    bytes_accessed = (rows_pad * Kp * 2            # bf16 activations
                      + Kp * Np * 2                # bf16 folded matrix
                      + 2 * rows_pad * pred_len * 4)  # f32 residual + output
    # VMEM: double-buffered activation/residual/output tiles + the constant M.
    vmem_need = 2 * (TM * Kp * 2 + 2 * TM * pred_len * 4) + 2 * Kp * Np * 2
    vmem_limit = int(min(64 << 20, max(2 * vmem_need, 32 << 20)))
    return pl.pallas_call(
        _affine_residual_kernel,
        out_shape=jax.ShapeDtypeStruct((rows_pad, pred_len), jnp.float32),
        grid=(grid,),
        in_specs=[
            pl.BlockSpec((TM, Kp), lambda i: (i, 0)),         # bf16 activations
            pl.BlockSpec((TM, pred_len), lambda i: (i, 0)),   # f32 residual (narrow, full-extent lanes)
            # Grid-invariant folded matrix.  Tiny here (Kp x Np bf16); if K or
            # pred_len grow large on v7x (64 MiB VMEM), add
            # pipeline_mode=pl.Buffered(1) and tile Np with a 2nd grid axis.
            pl.BlockSpec((Kp, Np), lambda i: (0, 0)),
        ],
        out_specs=pl.BlockSpec((TM, pred_len), lambda i: (i, 0)),
        compiler_params=pltpu.CompilerParams(
            dimension_semantics=("parallel",),
            vmem_limit_bytes=vmem_limit),
        cost_estimate=pl.CostEstimate(flops=flops, transcendentals=0,
                                      bytes_accessed=bytes_accessed),
    )(h_pad, res_pad, Mp)


# ----------------------------------------------------------------------------
# Full forward (jit this): rfft glue (plain JAX, fuses with the pack step) +
# single folded-affine Pallas matmul + residual.
# ----------------------------------------------------------------------------
def freqconv_forward(x1, x2, x3, Mp, *, K, pred_len, min_pallas_rows=0):
    B, H = x1.shape[0], x1.shape[1]
    rows = B * H
    # TODO(synk): rfft stays in plain JAX; Pallas/Mosaic has no FFT primitive.
    x1f, x2f, x3f = jnp.fft.rfft(x1), jnp.fft.rfft(x2), jnp.fft.rfft(x3)
    hcat = jnp.concatenate([x1f.imag, x2f.imag, x3f.imag,
                            x1f.real, x2f.real, x3f.real], axis=2)  # (B, H, 6, F)
    h0 = hcat.reshape(rows, -1).astype(jnp.float32)                 # (rows, K)
    res = (x1 + x2 + x3).reshape(rows, pred_len).astype(jnp.float32)

    if rows < min_pallas_rows:
        # Tiny-batch fallback: kernel launch overhead dominates, let XLA fuse.
        y = (jnp.dot(h0, Mp[:K, :pred_len].astype(jnp.float32))
             + Mp[K, :pred_len].astype(jnp.float32)[None, :] + res)
        return y.reshape(B, H, 1, pred_len)

    Kp, _ = Mp.shape
    TM = _row_tile(rows)
    rows_pad = _round_up(rows, TM)
    # bf16 activation slab with the 1.0 bias column at index K.  Under jit this
    # pad/cast fuses with the rfft/concat producer (no extra eager HBM pass).
    # Padded rows stay all-zero (including the bias column), so their outputs
    # are inert and sliced off below.
    h_pad = jnp.zeros((rows_pad, Kp), jnp.bfloat16)
    h_pad = h_pad.at[:rows, :K].set(h0.astype(jnp.bfloat16))
    h_pad = h_pad.at[:rows, K].set(1.0)
    if rows_pad == rows:
        res_pad = res
    else:
        res_pad = jnp.zeros((rows_pad, pred_len), jnp.float32).at[:rows].set(res)

    y = freqconv_affine_pallas(h_pad, res_pad, Mp, pred_len, rows_pad, TM)
    return y[:rows].reshape(B, H, 1, pred_len)


# ----------------------------------------------------------------------------
# Plain-JAX reference (mirrors the PyTorch forward) for validation
# ----------------------------------------------------------------------------
def reference_forward(x1, x2, x3, cfg, params):
    k = cfg["kernel_size"]
    x1f, x2f, x3f = jnp.fft.rfft(x1), jnp.fft.rfft(x2), jnp.fft.rfft(x3)
    h = jnp.concatenate([x1f.imag, x2f.imag, x3f.imag,
                         x1f.real, x2f.real, x3f.real], axis=2)
    h = jnp.transpose(h, (0, 2, 1, 3)).astype(jnp.float32)      # NCHW
    for i, L in enumerate(cfg["layers"]):
        d, pf, pb, oo, p = L["d"], L["pf"], L["pb"], L["oo"], L["pool"]
        W = h.shape[-1]
        hp = jnp.pad(h, ((0, 0), (0, 0), (0, 0), (pf, pb)))
        w_i, b_i = params["conv_w"][i], params["conv_b"][i]
        outs = []
        for co in range(L["c_out"]):
            ci = co // oo
            acc = jnp.full((h.shape[0], h.shape[2], W), 0.0) + b_i[co]
            for t in range(k):
                acc = acc + w_i[co, t] * hp[:, ci, :, t * d:t * d + W]
            outs.append(acc)
        h = jnp.stack(outs, axis=1)
        Wo = W // p
        h = h[..., :Wo * p].reshape(h.shape[0], h.shape[1], h.shape[2], Wo, p).mean(-1)
    y = jnp.einsum("bchw,pcw->bph", h, params["final_w"]) + params["final_b"][None, :, None]
    y = jnp.transpose(y[..., None], (0, 2, 3, 1))               # (B, H, 1, pred_len)
    return y + x1 + x2 + x3


# ----------------------------------------------------------------------------
if __name__ == "__main__":
    B, H = 2, 8
    c_in = 6            # forward concatenates 3 imag + 3 real planes -> 6 conv channels
    inp_len = 17        # odd, so rfft width == (inp_len + 1)//2 as assumed by __init__
    pred_len = 17       # residual add (y + x1 + x2 + x3) requires pred_len == inp_len
    kernel_size = 3

    assert inp_len % 2 == 1 and pred_len == inp_len
    cfg = build_config(c_in, inp_len, pred_len, kernel_size, order=2)

    key = jax.random.PRNGKey(0)
    key, kx1, kx2, kx3, kp = jax.random.split(key, 5)
    x1 = jax.random.normal(kx1, (B, H, 1, inp_len), jnp.float32)
    x2 = jax.random.normal(kx2, (B, H, 1, inp_len), jnp.float32)
    x3 = jax.random.normal(kx3, (B, H, 1, inp_len), jnp.float32)

    params = init_params(kp, cfg)
    M, c_row = build_affine(cfg, params)        # host-side affine fold of the stack
    Mp, K = prepare_folded(M, c_row)            # padded + bf16 ONCE (constant hoist)

    fwd = jax.jit(functools.partial(freqconv_forward, K=K, pred_len=pred_len,
                                    min_pallas_rows=0))
    y = fwd(x1, x2, x3, Mp)
    jax.block_until_ready(y)

    y_ref = reference_forward(x1, x2, x3, cfg, params)
    np.testing.assert_allclose(np.asarray(y), np.asarray(y_ref), rtol=2e-2, atol=2e-2)
    print("KERNEL_OK")
</pallas_src>

<mosaic_0001>
module attributes {stable_mosaic.version = 11 : i64} {
  func.func @_affine_residual_kernel(%arg0: i32, %arg1: memref<16x128xbf16, #tpu.memory_space<vmem>>, %arg2: memref<16x17xf32, #tpu.memory_space<vmem>>, %arg3: memref<128x128xbf16, #tpu.memory_space<vmem>>, %arg4: memref<16x17xf32, #tpu.memory_space<vmem>>) attributes {dimension_semantics = [#tpu.dimension_semantics<parallel>], iteration_bounds = array<i64: 1>, scalar_prefetch = 0 : i64, scratch_operands = 0 : i64, tpu.core_type = #tpu.core_type<tc>, window_params = [{transform_indices = @transform_0, window_bounds = array<i64: 16, 128>}, {transform_indices = @transform_1, window_bounds = array<i64: 16, 17>}, {pipeline_mode = #tpu.pipeline_mode<synchronous>, transform_indices = @transform_2, window_bounds = array<i64: 128, 128>}, {transform_indices = @transform_3, window_bounds = array<i64: 16, 17>}]} {
    %c0 = arith.constant 0 : index
    %c0_0 = arith.constant 0 : index
    %0 = vector.load %arg1[%c0, %c0_0] : memref<16x128xbf16, #tpu.memory_space<vmem>>, vector<16x128xbf16>
    %c0_1 = arith.constant 0 : index
    %c0_2 = arith.constant 0 : index
    %1 = vector.load %arg3[%c0_1, %c0_2] : memref<128x128xbf16, #tpu.memory_space<vmem>>, vector<128x128xbf16>
    %cst = arith.constant dense<0.000000e+00> : vector<16x128xf32>
    %2 = tpu.matmul %0, %1, %cst {dimension_numbers = #tpu.dot_dimension_numbers<[1], [0], [0], [1], [0, 0, 1, 1], [], []>} : vector<16x128xbf16>, vector<128x128xbf16>, vector<16x128xf32> -> vector<16x128xf32>
    %3 = vector.extract_strided_slice %2 {offsets = [0, 0], sizes = [16, 17], strides = [1, 1]} : vector<16x128xf32> to vector<16x17xf32>
    %c0_3 = arith.constant 0 : index
    %c0_4 = arith.constant 0 : index
    %4 = vector.load %arg2[%c0_3, %c0_4] : memref<16x17xf32, #tpu.memory_space<vmem>>, vector<16x17xf32>
    %5 = arith.addf %3, %4 : vector<16x17xf32>
    %c0_5 = arith.constant 0 : index
    %c0_6 = arith.constant 0 : index
    %6 = vector.load %arg4[%c0_5, %c0_6] : memref<16x17xf32, #tpu.memory_space<vmem>>, vector<16x17xf32>
    tpu.vector_store %arg4[%c0_5, %c0_6], %5 {strides = array<i32>} : memref<16x17xf32, #tpu.memory_space<vmem>>, vector<16x17xf32>,
    return
  }
  func.func @transform_0(%arg0: i32) -> (i32, i32) {
    %c0_i32 = arith.constant 0 : i32
    %c0_i32_0 = arith.constant 0 : i32
    return %arg0, %c0_i32 : i32, i32
  }
  func.func @transform_1(%arg0: i32) -> (i32, i32) {
    %c0_i32 = arith.constant 0 : i32
    %c0_i32_0 = arith.constant 0 : i32
    return %arg0, %c0_i32 : i32, i32
  }
  func.func @transform_2(%arg0: i32) -> (i32, i32) {
    %c0_i32 = arith.constant 0 : i32
    %c0_i32_0 = arith.constant 0 : i32
    %c0_i32_1 = arith.constant 0 : i32
    return %c0_i32, %c0_i32_0 : i32, i32
  }
  func.func @transform_3(%arg0: i32) -> (i32, i32) {
    %c0_i32 = arith.constant 0 : i32
    %c0_i32_0 = arith.constant 0 : i32
    return %arg0, %c0_i32 : i32, i32
  }
}

</mosaic_0001>

<bundles_post_ra>
// kernel: freqconv_forward.1
= control target key start
LH: loop header
LB: loop body
LE: loop exit
PB: predicated region body
PF: predicated region fallthrough
CT: control target
= control target key end

     0   :  { %s259_s0 = inlined_call_operand.vmem [shape: bf16[16,128], index: 0, kind: input, shape index: {}]   ;;  %s260_s1 = inlined_call_operand.vmem [shape: f32[16,17], index: 1, kind: input, shape index: {}]   ;;  %s261_s2 = inlined_call_operand.vmem [shape: bf16[128,128], index: 2, kind: input, shape index: {}]   ;;  %s262_s3 = inlined_call_operand.hbm [shape: f32[16,17], index: 3, kind: output, shape index: {}]  }
   0x1   :  { %v170_v0 = vld [vmem:[%s261_s2 + $0x38] sm:$0xff]  ;;  %v169_v1 = vld [vmem:[%s261_s2 + $0x30] sm:$0xff] }
   0x2   :  { %87 = vmatpush.bf16.msra.mxu0 %v170_v0 }
   0x3   :  { %8 = vsyncpa [#allocation3], 0  ;;  %v168_v2 = vld [vmem:[%s261_s2 + $0x28] sm:$0xff]  ;;  %v167_v3 = vld [vmem:[%s261_s2 + $0x20] sm:$0xff]  ;;  %vm105_vm0 = vcmask 138240   ;;  %s200_s5 = smov [#allocation2]  }
   0x4   :  { %v166_v4 = vld [vmem:[%s261_s2 + $0x18] sm:$0xff]  ;;  %v165_v5 = vld [vmem:[%s261_s2 + $0x10] sm:$0xff]  ;;  %v164_v6 = vld [vmem:[%s261_s2 + $0x8] sm:$0xff]  ;;  %s112_s6 = sshll.u32 %s200_s5, 4  ;;  %s202_s11 = smov 8   ;;  %s113_s6 = int_to_ptr.vmem [resolvable:$true] %s112_s6 }
   0x5   :  { %v163_v7 = vld [vmem:[%s261_s2] sm:$0xff]  ;;  %s114_s2 = sshll.u32 %s262_s3, 4  ;;  %v102_v12 = vld [vmem:[%s260_s1 + $0x8] sm:$0xff]  ;;  %s115_s2 = int_to_ptr.hbm [resolvable:$true] %s114_s2 }
   0x6   :  { %88 = vmatpush.bf16.msra.mxu0 %v169_v1  ;;  %v162_v8 = vld [vmem:[%s259_s0] sm:$0xff]  ;;  %s201_s0 = smov 128  }
   0x7   :  { %v101_v9 = vld [vmem:[%s260_s1] sm:$0xff] }
   0xa   :  { %89 = vmatpush.bf16.msra.mxu0 %v168_v2 }
   0xe   :  { %90 = vmatpush.bf16.msra.mxu0 %v167_v3 }
  0x12   :  { %91 = vmatpush.bf16.msra.mxu0 %v166_v4 }
  0x16   :  { %92 = vmatpush.bf16.msra.mxu0 %v165_v5 }
  0x1a   :  { %93 = vmatpush.bf16.msra.mxu0 %v164_v6 }
  0x1e   :  { %94 = vmatpush.bf16.msra.mxu0 %v163_v7 }
  0x21   :  { %95 = vmatmul.bf16.vlgmr.msra.gmra.mxu0 %v162_v8 }
  0x9e   :  { %v96_v10 = vpop.f32.mrf.mxu0 }
  0x9f   :  { %v103_v11 = vadd.f32 %v101_v9, %v96_v10 }
  0xa1   :  { %106 = vst.msk [vmem:[#allocation2] sm:$0xff] %vm105_vm0, %v103_v11 }
  0xa6   :  { %v98_v13 = vpop.f32.mrf.mxu0 }
  0xa7   :  { %v104_v14 = vadd.f32 %v102_v12, %v98_v13 }
  0xa9   :  { %107 = vst.msk [vmem:[#allocation2 + $0x8] sm:$0xff] %vm105_vm0, %v104_v14 }
  0xaa   :  { %120 = dma.vmem_to_hbm [thread:$0]  %s113_s6, 256, %s115_s2, [#allocation3], %s201_s0, %s201_s0, %s202_s11  }
  0xab   :  { %198 = dma.done.wait [#allocation3], 256  }
  0xac   :  { %199 = vsyncadd [#allocation3], 4294967040 }
  0xad   :  { %125 = vsyncpa [#allocation3], 1 }

</bundles_post_ra>
